<compile_context>
chip_gen: v6e
topology: v6e:2x2x1
jax: 0.10.0
libtpu: 0.0.40
codegen_flags: <defaults>
</compile_context>

<pallas_src>
import functools

import jax
import jax.numpy as jnp
from jax.experimental import pallas as pl
from jax.experimental.pallas import tpu as pltpu


def _attention_kernel(g_ref, x_ref, wg_ref, wx_ref, b_ref, wp_ref, bp_ref, o_ref,
                      *, chunk):
    # Channels on sublanes, pixels on lanes:
    #   g_ref: (F_g, TILE)    x_ref: (F_l, TILE)   o_ref: (F_l, TILE)
    #   wg_ref: (F_int, F_g)  wx_ref: (F_int, F_l)
    #   b_ref: (F_int, 1)  = folded (bg + bx)
    #   wp_ref: (F_int, 1) = folded psi weights (column)
    #   bp_ref: (1, 1) scalar in SMEM
    wg = wg_ref[...]
    wx = wx_ref[...]
    b = b_ref[...]
    wp = wp_ref[...]
    bp = bp_ref[0, 0]

    tile = o_ref.shape[-1]
    # Static lane-chunk loop: the (F_int, chunk) hidden activation for one chunk
    # stays in vregs (no VMEM spill round-trip), while the DMA block stays big.
    for off in range(0, tile, chunk):
        g = g_ref[:, off:off + chunk]
        x = x_ref[:, off:off + chunk]

        # g1 + x1 = BN(Conv1x1(g)) + BN(Conv1x1(x)); biases combined in one add.
        gx = (jnp.dot(wg, g, preferred_element_type=jnp.float32)
              + jnp.dot(wx, x, preferred_element_type=jnp.float32))
        h = jnp.maximum(gx + b, 0.0)                       # (F_int, chunk)

        # psi = Sigmoid(BN(Conv1x1(h))): Cout == 1, so VPU multiply + sublane
        # (XLU) reduce instead of a wasteful N=1 MXU matmul; fused per chunk.
        logits = jnp.sum(h * wp, axis=0, keepdims=True) + bp
        psi = jax.nn.sigmoid(logits)                       # (1, chunk)

        # out = x * psi (broadcast over channels / sublanes)
        o_ref[:, off:off + chunk] = (x.astype(jnp.float32) * psi).astype(o_ref.dtype)


def _fold_bn(w, b, gamma, beta, mean, var, eps=1e-5):
    """Fold eval-mode BatchNorm into a 1x1 conv (w: (Cout, Cin), b: (Cout,))."""
    scale = gamma / jnp.sqrt(var + eps)
    return w * scale[:, None], (b - mean) * scale + beta


def _round_up(v, m):
    return -(-v // m) * m


def attention_block(g, x, params, *, act_dtype=None):
    """g: (B, F_g, H, W), x: (B, F_l, H, W)  ->  (B, F_l, H, W)  (eval-mode BN)."""
    B, F_g, H, W = g.shape
    _, F_l, _, _ = x.shape
    F_int = params["wg"].shape[0]
    HW = H * W

    # Fold eval-mode BN into each 1x1 conv (tiny host-side math).
    wg, bg = _fold_bn(params["wg"], params["bg"], params["g_gamma"],
                      params["g_beta"], params["g_mean"], params["g_var"])
    wx, bx = _fold_bn(params["wx"], params["bx"], params["x_gamma"],
                      params["x_beta"], params["x_mean"], params["x_var"])
    wp, bp = _fold_bn(params["wp"], params["bp"], params["p_gamma"],
                      params["p_beta"], params["p_mean"], params["p_var"])

    out_dtype = x.dtype
    act = jnp.dtype(x.dtype) if act_dtype is None else jnp.dtype(act_dtype)
    itemsize = act.itemsize

    # NCHW -> (B, C, H*W): contiguous reshape, no HBM transpose / pad passes.
    g3 = g.reshape(B, F_g, HW).astype(act)
    x3 = x.reshape(B, F_l, HW).astype(act)

    # ---- generation-aware tile / VMEM sizing -------------------------------
    try:
        vmem_cap = int(pltpu.get_tpu_info().vmem_capacity_bytes)
    except Exception:  # non-TPU trace / unknown chip: assume smallest (v7x 64 MiB)
        vmem_cap = 64 << 20

    # Lane sub-chunk: keep the live (F_int, chunk) f32 intermediate <= ~192 KiB
    # so it fits comfortably in the vreg file.  Always a multiple of 128.
    chunk = 512
    while chunk > 128 and F_int * chunk * 4 > (192 << 10):
        chunk //= 2

    # Lane tile = DMA granularity.  Multiple of `chunk` (itself a 128-multiple)
    # so every store is lane-dense; the partial tail block (HW % tile) is
    # handled by Pallas' masked writeback, never a host pad.  128 MiB-VMEM
    # chips (v5e/v6e) get bigger tiles than v7x (64 MiB per TC).
    tile_cap = 4096 if vmem_cap >= (96 << 20) else 2048
    tile = _round_up(HW, 128)
    if tile <= chunk:
        chunk = tile
    else:
        tile = min(_round_up(tile, chunk), tile_cap)

    def _vmem_need(t):
        acts = 2 * (F_g + 2 * F_l) * t * itemsize          # double-buffered g/x/out
        wts = 2 * 4 * F_int * (F_g + F_l + 2)              # resident folded weights
        return acts + wts + (2 << 20)                      # margin / scratch

    budget = max(int(0.6 * vmem_cap), 16 << 20)
    while tile > chunk and _vmem_need(tile) > budget:
        tile -= chunk

    # Guarantee >= 2 grid steps so megacore / 2-TC chips (v7x) both get work.
    while tile > chunk and B * (-(-HW // tile)) < 2:
        tile = max(chunk, _round_up(tile // 2, chunk))

    n_tiles = -(-HW // tile)
    vmem_limit = int(min(max(2 * _vmem_need(tile), 16 << 20), budget))

    # ---- kernel operands ----------------------------------------------------
    f32 = jnp.float32
    wdt = f32 if act == jnp.float32 else act
    wg_k = wg.astype(wdt)                           # (F_int, F_g)
    wx_k = wx.astype(wdt)                           # (F_int, F_l)
    b_k = (bg + bx).reshape(F_int, 1).astype(f32)   # combined projection bias
    wp_k = wp.reshape(F_int, 1).astype(f32)         # psi weights as a column
    bp_k = bp.reshape(1, 1).astype(f32)             # psi bias (scalar via SMEM)

    cost = pl.CostEstimate(
        flops=2 * B * HW * F_int * (F_g + F_l + 1),
        transcendentals=B * HW,
        bytes_accessed=B * HW * (F_g + 2 * F_l) * itemsize,
    )

    row = lambda c: pl.BlockSpec((None, c, tile), lambda b, j: (b, 0, j))
    rep = lambda r, c: pl.BlockSpec((r, c), lambda b, j: (0, 0))

    out3 = pl.pallas_call(
        functools.partial(_attention_kernel, chunk=chunk),
        out_shape=jax.ShapeDtypeStruct((B, F_l, HW), out_dtype),
        grid_spec=pltpu.PrefetchScalarGridSpec(
            num_scalar_prefetch=0,
            grid=(B, n_tiles),
            in_specs=[
                row(F_g),                                           # g pixel tile
                row(F_l),                                           # x pixel tile
                rep(F_int, F_g),                                    # folded W_g
                rep(F_int, F_l),                                    # folded W_x
                rep(F_int, 1),                                      # folded bg+bx
                rep(F_int, 1),                                      # folded psi W
                pl.BlockSpec(memory_space=pltpu.MemorySpace.SMEM),  # psi bias
            ],
            out_specs=row(F_l),
        ),
        compiler_params=pltpu.CompilerParams(
            dimension_semantics=("parallel", "parallel"),
            vmem_limit_bytes=vmem_limit,
        ),
        cost_estimate=cost,
    )(g3, x3, wg_k, wx_k, b_k, wp_k, bp_k)

    return out3.reshape(B, F_l, H, W)


def _reference(g, x, params):
    """Pure-JAX reference mirroring the PyTorch forward (eval-mode BN)."""
    wg, bg = _fold_bn(params["wg"], params["bg"], params["g_gamma"],
                      params["g_beta"], params["g_mean"], params["g_var"])
    wx, bx = _fold_bn(params["wx"], params["bx"], params["x_gamma"],
                      params["x_beta"], params["x_mean"], params["x_var"])
    wp, bp = _fold_bn(params["wp"], params["bp"], params["p_gamma"],
                      params["p_beta"], params["p_mean"], params["p_var"])
    g1 = jnp.einsum("bchw,oc->bohw", g, wg) + bg[None, :, None, None]
    x1 = jnp.einsum("bchw,oc->bohw", x, wx) + bx[None, :, None, None]
    h = jnp.maximum(g1 + x1, 0.0)
    psi = jax.nn.sigmoid(jnp.einsum("bchw,oc->bohw", h, wp)
                         + bp[None, :, None, None])
    return x * psi


def make_params(F_g, F_l, F_int, key):
    ks = jax.random.split(key, 6)
    return {
        "wg": jax.random.normal(ks[0], (F_int, F_g), jnp.float32) * 0.2,
        "bg": jax.random.normal(ks[1], (F_int,), jnp.float32) * 0.1,
        "wx": jax.random.normal(ks[2], (F_int, F_l), jnp.float32) * 0.2,
        "bx": jax.random.normal(ks[3], (F_int,), jnp.float32) * 0.1,
        "wp": jax.random.normal(ks[4], (1, F_int), jnp.float32) * 0.2,
        "bp": jax.random.normal(ks[5], (1,), jnp.float32) * 0.1,
        # deterministic BatchNorm (eval-mode) parameters / running stats
        "g_gamma": jnp.linspace(0.9, 1.1, F_int), "g_beta": jnp.linspace(-0.1, 0.1, F_int),
        "g_mean": jnp.linspace(-0.05, 0.05, F_int), "g_var": jnp.linspace(0.8, 1.2, F_int),
        "x_gamma": jnp.linspace(1.1, 0.9, F_int), "x_beta": jnp.linspace(0.1, -0.1, F_int),
        "x_mean": jnp.linspace(0.05, -0.05, F_int), "x_var": jnp.linspace(1.2, 0.8, F_int),
        "p_gamma": jnp.ones((1,)), "p_beta": jnp.zeros((1,)),
        "p_mean": jnp.zeros((1,)), "p_var": jnp.ones((1,)),
    }


if __name__ == "__main__":
    B, F_g, F_l, F_int, H, W = 2, 4, 4, 8, 16, 16
    key = jax.random.PRNGKey(0)
    kg, kx, kp = jax.random.split(key, 3)

    g = jax.random.normal(kg, (B, F_g, H, W), jnp.float32)
    x = jax.random.normal(kx, (B, F_l, H, W), jnp.float32)
    params = make_params(F_g, F_l, F_int, kp)

    out = jax.block_until_ready(attention_block(g, x, params))
    ref = jax.block_until_ready(_reference(g, x, params))

    assert out.shape == (B, F_l, H, W)
    assert jnp.allclose(out, ref, atol=1e-5, rtol=1e-5), "mismatch vs reference"
    print("KERNEL_OK")
</pallas_src>

<mosaic_0001>
module attributes {stable_mosaic.version = 11 : i64} {
  func.func @_attention_kernel(%arg0: i32, %arg1: i32, %arg2: memref<1x4x256xf32, #tpu.memory_space<vmem>>, %arg3: memref<1x4x256xf32, #tpu.memory_space<vmem>>, %arg4: memref<8x4xf32, #tpu.memory_space<vmem>>, %arg5: memref<8x4xf32, #tpu.memory_space<vmem>>, %arg6: memref<8x1xf32, #tpu.memory_space<vmem>>, %arg7: memref<8x1xf32, #tpu.memory_space<vmem>>, %arg8: memref<1x1xf32, #tpu.memory_space<smem>>, %arg9: memref<1x4x256xf32, #tpu.memory_space<vmem>>) attributes {dimension_semantics = [#tpu.dimension_semantics<parallel>, #tpu.dimension_semantics<parallel>], iteration_bounds = array<i64: 2, 1>, scalar_prefetch = 0 : i64, scratch_operands = 0 : i64, tpu.core_type = #tpu.core_type<tc>, window_params = [{transform_indices = @transform_0, window_bounds = array<i64: 1, 4, 256>}, {transform_indices = @transform_1, window_bounds = array<i64: 1, 4, 256>}, {pipeline_mode = #tpu.pipeline_mode<synchronous>, transform_indices = @transform_2, window_bounds = array<i64: 8, 4>}, {pipeline_mode = #tpu.pipeline_mode<synchronous>, transform_indices = @transform_3, window_bounds = array<i64: 8, 4>}, {pipeline_mode = #tpu.pipeline_mode<synchronous>, transform_indices = @transform_4, window_bounds = array<i64: 8, 1>}, {pipeline_mode = #tpu.pipeline_mode<synchronous>, transform_indices = @transform_5, window_bounds = array<i64: 8, 1>}, {transform_indices = @transform_6, window_bounds = array<i64: 1, 1>}, {transform_indices = @transform_7, window_bounds = array<i64: 1, 4, 256>}]} {
    %c0 = arith.constant 0 : index
    %c0_0 = arith.constant 0 : index
    %0 = vector.load %arg4[%c0, %c0_0] : memref<8x4xf32, #tpu.memory_space<vmem>>, vector<8x4xf32>
    %c0_1 = arith.constant 0 : index
    %c0_2 = arith.constant 0 : index
    %1 = vector.load %arg5[%c0_1, %c0_2] : memref<8x4xf32, #tpu.memory_space<vmem>>, vector<8x4xf32>
    %c0_3 = arith.constant 0 : index
    %c0_4 = arith.constant 0 : index
    %2 = vector.load %arg6[%c0_3, %c0_4] : memref<8x1xf32, #tpu.memory_space<vmem>>, vector<8x1xf32>
    %c0_5 = arith.constant 0 : index
    %c0_6 = arith.constant 0 : index
    %3 = vector.load %arg7[%c0_5, %c0_6] : memref<8x1xf32, #tpu.memory_space<vmem>>, vector<8x1xf32>
    %c0_7 = arith.constant 0 : index
    %c0_8 = arith.constant 0 : index
    %4 = memref.load %arg8[%c0_7, %c0_8] : memref<1x1xf32, #tpu.memory_space<smem>>
    %c0_9 = arith.constant 0 : index
    %c0_10 = arith.constant 0 : index
    %c0_11 = arith.constant 0 : index
    %5 = vector.load %arg2[%c0_9, %c0_10, %c0_11] : memref<1x4x256xf32, #tpu.memory_space<vmem>>, vector<1x4x256xf32>
    %6 = vector.shape_cast %5 : vector<1x4x256xf32> to vector<4x256xf32>
    %c0_12 = arith.constant 0 : index
    %c0_13 = arith.constant 0 : index
    %c0_14 = arith.constant 0 : index
    %7 = vector.load %arg3[%c0_12, %c0_13, %c0_14] : memref<1x4x256xf32, #tpu.memory_space<vmem>>, vector<1x4x256xf32>
    %8 = vector.shape_cast %7 : vector<1x4x256xf32> to vector<4x256xf32>
    %cst = arith.constant dense<0.000000e+00> : vector<8x256xf32>
    %9 = tpu.matmul %0, %6, %cst {dimension_numbers = #tpu.dot_dimension_numbers<[1], [0], [0], [1], [0, 0, 1, 1], [], []>} : vector<8x4xf32>, vector<4x256xf32>, vector<8x256xf32> -> vector<8x256xf32>
    %cst_15 = arith.constant dense<0.000000e+00> : vector<8x256xf32>
    %10 = tpu.matmul %1, %8, %cst_15 {dimension_numbers = #tpu.dot_dimension_numbers<[1], [0], [0], [1], [0, 0, 1, 1], [], []>} : vector<8x4xf32>, vector<4x256xf32>, vector<8x256xf32> -> vector<8x256xf32>
    %11 = arith.addf %9, %10 : vector<8x256xf32>
    %12 = vector.broadcast %2 : vector<8x1xf32> to vector<8x256xf32>
    %13 = arith.addf %11, %12 : vector<8x256xf32>
    %cst_16 = arith.constant 0.000000e+00 : f32
    %14 = vector.broadcast %cst_16 : f32 to vector<8x256xf32>
    %15 = arith.maximumf %13, %14 : vector<8x256xf32>
    %16 = vector.broadcast %3 : vector<8x1xf32> to vector<8x256xf32>
    %17 = arith.mulf %15, %16 : vector<8x256xf32>
    %cst_17 = arith.constant dense<0.000000e+00> : vector<256xf32>
    %18 = vector.multi_reduction <add>, %17, %cst_17 [0] : vector<8x256xf32> to vector<256xf32>
    %19 = vector.shape_cast %18 : vector<256xf32> to vector<1x256xf32>
    %20 = vector.broadcast %4 : f32 to vector<1x256xf32>
    %21 = arith.addf %19, %20 : vector<1x256xf32>
    %22 = arith.negf %21 : vector<1x256xf32>
    %23 = math.exp %22 : vector<1x256xf32>
    %cst_18 = arith.constant 1.000000e+00 : f32
    %24 = vector.broadcast %cst_18 : f32 to vector<1x256xf32>
    %25 = arith.addf %24, %23 : vector<1x256xf32>
    %26 = arith.divf %24, %25 : vector<1x256xf32>
    %27 = vector.broadcast %26 : vector<1x256xf32> to vector<4x256xf32>
    %28 = arith.mulf %8, %27 : vector<4x256xf32>
    %c0_19 = arith.constant 0 : index
    %c0_20 = arith.constant 0 : index
    %c0_21 = arith.constant 0 : index
    %29 = vector.load %arg9[%c0_19, %c0_20, %c0_21] : memref<1x4x256xf32, #tpu.memory_space<vmem>>, vector<1x4x256xf32>
    %30 = vector.shape_cast %29 : vector<1x4x256xf32> to vector<4x256xf32>
    %31 = vector.shape_cast %28 : vector<4x256xf32> to vector<1x4x256xf32>
    tpu.vector_store %arg9[%c0_19, %c0_20, %c0_21], %31 {strides = array<i32>} : memref<1x4x256xf32, #tpu.memory_space<vmem>>, vector<1x4x256xf32>,
    return
  }
  func.func @transform_0(%arg0: i32, %arg1: i32) -> (i32, i32, i32) {
    %c0_i32 = arith.constant 0 : i32
    %c0_i32_0 = arith.constant 0 : i32
    return %arg0, %c0_i32, %arg1 : i32, i32, i32
  }
  func.func @transform_1(%arg0: i32, %arg1: i32) -> (i32, i32, i32) {
    %c0_i32 = arith.constant 0 : i32
    %c0_i32_0 = arith.constant 0 : i32
    return %arg0, %c0_i32, %arg1 : i32, i32, i32
  }
  func.func @transform_2(%arg0: i32, %arg1: i32) -> (i32, i32) {
    %c0_i32 = arith.constant 0 : i32
    %c0_i32_0 = arith.constant 0 : i32
    %c0_i32_1 = arith.constant 0 : i32
    return %c0_i32, %c0_i32_0 : i32, i32
  }
  func.func @transform_3(%arg0: i32, %arg1: i32) -> (i32, i32) {
    %c0_i32 = arith.constant 0 : i32
    %c0_i32_0 = arith.constant 0 : i32
    %c0_i32_1 = arith.constant 0 : i32
    return %c0_i32, %c0_i32_0 : i32, i32
  }
  func.func @transform_4(%arg0: i32, %arg1: i32) -> (i32, i32) {
    %c0_i32 = arith.constant 0 : i32
    %c0_i32_0 = arith.constant 0 : i32
    %c0_i32_1 = arith.constant 0 : i32
    return %c0_i32, %c0_i32_0 : i32, i32
  }
  func.func @transform_5(%arg0: i32, %arg1: i32) -> (i32, i32) {
    %c0_i32 = arith.constant 0 : i32
    %c0_i32_0 = arith.constant 0 : i32
    %c0_i32_1 = arith.constant 0 : i32
    return %c0_i32, %c0_i32_0 : i32, i32
  }
  func.func @transform_6(%arg0: i32, %arg1: i32) -> (i32, i32) {
    %c0_i32 = arith.constant 0 : i32
    %c0_i32_0 = arith.constant 0 : i32
    %c0_i32_1 = arith.constant 0 : i32
    return %c0_i32, %c0_i32_0 : i32, i32
  }
  func.func @transform_7(%arg0: i32, %arg1: i32) -> (i32, i32, i32) {
    %c0_i32 = arith.constant 0 : i32
    %c0_i32_0 = arith.constant 0 : i32
    return %arg0, %c0_i32, %arg1 : i32, i32, i32
  }
}

</mosaic_0001>

<bundles_post_ra>
// kernel: tpu_custom_call.1
= control target key start
LH: loop header
LB: loop body
LE: loop exit
PB: predicated region body
PF: predicated region fallthrough
CT: control target
= control target key end

     0   :  { %s1012_s0 = inlined_call_operand.vmem [shape: f32[2,4,256], index: 0, kind: input, shape index: {}]   ;;  %s1013_s1 = inlined_call_operand.vmem [shape: f32[2,4,256], index: 1, kind: input, shape index: {}]   ;;  %s1014_s2 = inlined_call_operand.vmem [shape: f32[8,4], index: 2, kind: input, shape index: {}]   ;;  %s1015_s3 = inlined_call_operand.vmem [shape: f32[8,4], index: 3, kind: input, shape index: {}]   ;;  %s1016_s4 = inlined_call_operand.vmem [shape: f32[8,1], index: 4, kind: input, shape index: {}]   ;;  %s1017_s5 = inlined_call_operand.vmem [shape: f32[8,1], index: 5, kind: input, shape index: {}]   ;;  %s1018_s6 = inlined_call_operand.<no memory space> [shape: f32[1,1], index: 6, kind: input, shape index: {}]   ;;  %s1019_s7 = inlined_call_operand.hbm [shape: f32[2,4,256], index: 7, kind: output, shape index: {}]  }
   0x1   :  { %12 = sst [smem:[#allocation2]] %s1018_s6 }
   0x2   :  { %13 = vsyncpa [#allocation4], 0 }
   0x3   :  { %15 = vsyncpa [#allocation4 + $0x1], 0  ;;  %s892_s26 = smov 0   ;;  %s894_s27 = smov 0  }
   0x4   :  { %s896_s28 = smov 0   ;;  %s898_s29 = smov 0  }
   0x5   :  { %s900_s30 = smov 0   ;;  %s902_s8 = smov 0  }
   0x6 LB: > { %s674_s6 = sadd.s32 4294967295, %s844_s8   ;;  %s675_s9 = sadd.s32 4294967294, %s844_s8   ;;  %s844_s8 = sphi %s902_s8, %s21_s8   ;;  %s840_s30 = sphi %s900_s30, %s1026_s30   ;;  %s836_s29 = sphi %s898_s29, %s1025_s29   ;;  %s832_s28 = sphi %s896_s28, %s1024_s28   ;;  %s828_s27 = sphi %s894_s27, %s1023_s27   ;;  %s824_s26 = sphi %s892_s26, %s1022_s26  }
   0x7   : > { %s33_s10 = sadd.s32 1, %s840_s30  ;;  %s203_s11 = sadd.s32 1, %s832_s28 }
   0x8   : > { %p35_p0 = scmp.ge.s32.totalorder %s33_s10, 2  ;;  %p213_p1 = scmp.ne.s32.totalorder %s832_s28, %s828_s27 }
   0x9   : > { %p214_p2 = scmp.eq.s32.totalorder %s674_s6, 1  ;;  %p219_p3 = scmp.ne.s32.totalorder %s828_s27, %s824_s26 }
   0xa   : > { %s1028_s10 = smov (%p35_p0, %s33_s10), 0  ;;  %p220_p5 = scmp.eq.s32.totalorder %s675_s9, 1 }
   0xb   : > { %p932_p4 = por %p214_p2, %p213_p1  ;;  %s198_s13 = ssub.s32 %s840_s30, %s1028_s10 }
   0xc   : > { %p678_p6 = scmp.ge.s32.totalorder %s844_s8, 1  ;;  %p201_p7 = scmp.eq.s32.totalorder %s198_s13, 0 }
   0xd   : > { %p939_p8 = por %p220_p5, %p219_p3  ;;  %p279_p9 = scmp.lt.s32.totalorder %s844_s8, 3 }
   0xe   : > { %s945_s15 = scalar_select %p201_p7, %s832_s28, %s203_s11  }
   0xf   : > { %p280_p10 = pnand %p678_p6, %p279_p9 }
  0x10   : > { %p325_p11 = scmp.lt.s32.totalorder (!%p280_p10), %s836_s29, 1  ;;  %s699_s21 = sshll.u32 (!%p280_p10), %s836_s29, 7 }
  0x11   : > { %283 = sbr.rel (%p280_p10) target bundleno = 298 (0x12a), region = 48  ;;  %s578_s6 = scalar_lea.hbm (!%p280_p10), %s1019_s7, %s699_s21 }
  0x12   : > { %s848_s13 = smov (!%p280_p10), [#allocation3]  }
  0x13   : > { %s772_s16 = sshll.u32 (!%p280_p10), %s848_s13, 4  ;;  %s773_s16 = int_to_ptr.vmem [resolvable:$false] %s772_s16 }
  0x16   : > { %v846_v0 = vmov 0.0   ;;  %v347_v1 = vld [vmem:[%s1016_s4] sm:$0xff]  ;;  %s326_s18 = scalar_select %p325_p11, %s836_s29, 1  ;;  %v847_v2 = vmov 0   ;;  %vm358_vm0 = vcmask 1043456   ;;  %vm354_vm1 = vcmask 31744  }
  0x17   : > { %427 = vmatprep.mubr.f32.mxu0 %v846_v0  ;;  %507 = vmatprep.mubr.f32.mxu1 %v846_v0  ;;  %v348_v3 = vld [vmem:[%s1017_s5] sm:$0xff]  ;;  %s774_s29 = scalar_lea.vmem %s773_s16, 256 }
  0x18   : > { %757 = vset.pattern.permute.xlu0 %v847_v2  ;;  %s697_s19 = sshll.u32 %s326_s18, 3  ;;  %v346_v8 = vld [vmem:[%s1015_s3] sm:$0xff]  ;;  %s349_s18 = sld [smem:[#allocation2]] }
  0x19   : > { %516 = vperm.xlu0 %757, %v347_v1   ;;  %s342_s24 = scalar_lea.vmem %s1013_s1, %s697_s19  ;;  %s332_s9 = scalar_lea.vmem %s1012_s0, %s697_s19  ;;  %v345_v9 = vld [vmem:[%s1014_s2] sm:$0xff] }
  0x1a   : > { %v961_v4 = vld [vmem:[%s342_s24] sm:$0xff]  ;;  %s321_s19 = sand.u32 1, %s828_s27  }
  0x1b   : > { %v350_v5 = vld [vmem:[%s332_s9] sm:$0xff]  ;;  %v353_v6 = vcombine.high %v961_v4, %v961_v4  ;;  %s679_s20 = sshll.u32 %s321_s19, 3  ;;  %s564_s9 = scalar_lea.sflag [#allocation4], %s321_s19 }
  0x1c   : > { %v435_v7 = vcombine.high %v350_v5, %v350_v5  ;;  %s323_s22 = scalar_lea.vmem [#allocation3], %s679_s20 }
  0x1d   : > { %525 = vperm.xlu0 %757, %v348_v3   ;;  %684 = vmatprep.subr.msk.mxu0 %vm358_vm0, %v353_v6  ;;  %s580_s23 = sshll.u32 %s323_s22, 4  ;;  %s581_s23 = int_to_ptr.vmem [resolvable:$true] %s580_s23 }
  0x1e   : > { %687 = vmatprep.subr.msk.mxu1 %vm358_vm0, %v435_v7  ;;  %685 = vmatpush1.msk.msra.mxu0 %vm358_vm0, %v961_v4  ;;  %v542_v33 = vstv %s349_s18  ;;  %s768_s11 = scalar_lea.vmem %s581_s23, 128  ;;  %p775_p1 = scmp.lt.s32.totalorder %s581_s23, %s773_s16 }
  0x1f   : > { %688 = vmatpush1.msk.msra.mxu1 %vm358_vm0, %v350_v5  ;;  %686 = vmatmul.mubr.msk.f32.vlgmr.msra.gmra.mxu0 %vm354_vm1, %v346_v8  ;;  %p769_p12 = scmp.ne.s32.totalorder %s581_s23, %s768_s11  ;;  %p776_p2 = scmp.lt.s32.totalorder %s774_s29, %s768_s11 }
  0x20   : > { %689 = vmatmul.mubr.msk.f32.vlgmr.msra.gmra.mxu1 %vm354_vm1, %v345_v9 }
  0x21   : > { %p770_p13 = pnand %p769_p12, %p932_p4  ;;  %p777_p3 = por %p776_p2, %p775_p1 }
  0x23   : > { %p771_p0 = pneg %p770_p13 }
  0x25   : > { %p778_p5 = pnand %p777_p3, %p771_p0 }
  0x94   : > { %v517_v10 = vpop.permute.xlu0 %516 }
  0x98   : > { %v526_v20 = vpop.permute.xlu0 %525 }
  0xdf   : > { %v429_v11 = vpop.f32.mrf.mxu0 }
  0xe0   : > { %v509_v12 = vpop.f32.mrf.mxu1 }
  0xe1   : > { %v510_v13 = vadd.f32 %v509_v12, %v429_v11  ;;  %v431_v14 = vpop.f32.mrf.mxu0 }
  0xe2   : > { %v511_v15 = vpop.f32.mrf.mxu1 }
  0xe3   : > { %v519_v16 = vadd.f32 %v517_v10, %v510_v13  ;;  %v512_v17 = vadd.f32 %v511_v15, %v431_v14 }
  0xe5   : > { %v520_v18 = vadd.f32 %v517_v10, %v512_v17  ;;  %v521_v19 = vmax.f32 %v519_v16, 0.0 }
  0xe7   : > { %v522_v21 = vmax.f32 %v520_v18, 0.0  ;;  %v528_v22 = vmul.f32 %v526_v20, %v521_v19 }
  0xe9   : > { %v529_v23 = vmul.f32 %v526_v20, %v522_v21  ;;  %v530_v24 = vrot.slane %v528_v22, 4 }
  0xeb   : > { %v531_v25 = vadd.f32 %v530_v24, %v528_v22  ;;  %v536_v26 = vrot.slane %v529_v23, 4 }
  0xed   : > { %v532_v27 = vrot.slane %v531_v25, 2  ;;  %v537_v28 = vadd.f32 %v536_v26, %v529_v23 }
  0xef   : > { %v533_v29 = vadd.f32 %v532_v27, %v531_v25  ;;  %v538_v30 = vrot.slane %v537_v28, 2 }
  0xf1   : > { %v534_v31 = vrot.slane %v533_v29, 1  ;;  %v539_v32 = vadd.f32 %v538_v30, %v537_v28 }
  0xf3   : > { %v535_v34 = vadd.f32 %v534_v31, %v533_v29  ;;  %v540_v35 = vrot.slane %v539_v32, 1 }
  0xf5   : > { %v541_v36 = vadd.f32 %v540_v35, %v539_v32  ;;  %v543_v37 = vadd.f32 %v542_v33, %v535_v34 }
  0xf7   : > { %v544_v38 = vadd.f32 %v542_v33, %v541_v36  ;;  %v690_v39 = vmul.f32 -1.442695, %v543_v37 }
  0xf9   : > { %760 = vpow2.f32 %v690_v39  ;;  %v691_v40 = vmul.f32 -1.442695, %v544_v38 }
  0xfb   : > { %762 = vpow2.f32 %v691_v40 }
 0x106   : > { %v761_v41 = vpop.eup %760 }
 0x107   : > { %v551_v42 = vadd.f32 1.0, %v761_v41 }
 0x108   : > { %v763_v43 = vpop.eup %762 }
 0x109   : > { %v552_v44 = vadd.f32 1.0, %v763_v43  ;;  %764 = vrcp.f32 %v551_v42 }
 0x10b   : > { %766 = vrcp.f32 %v552_v44 }
 0x116   : > { %v765_v45 = vpop.eup %764 }
 0x118   : > { %v767_v46 = vpop.eup %766 }
 0x119   : > { %v559_v47 = vcombine.low %v765_v45, %v767_v46 }
 0x11b   : > { %v561_v48 = vmul.f32 %v559_v47, %v961_v4 }
 0x11d   : > { %562 = vst [vmem:[%s323_s22] sm:$0xff] %v561_v48 }
 0x11e   : > { %781 = shalt.err (!%p778_p5)
}
 0x11f   : > { %s782_s17 = scalar_lea.hbm %s578_s6, 128  ;;  %s786_s20 = scalar_lea.hbm %s1019_s7, 256 }
 0x120   : > { %p783_p6 = scmp.ne.s32.totalorder %s578_s6, %s782_s17  ;;  %p787_p10 = scmp.lt.s32.totalorder %s578_s6, %s1019_s7 }
 0x121   : > { %p788_p11 = scmp.lt.s32.totalorder %s786_s20, %s782_s17 }
 0x122   : > { %p784_p7 = pnand %p783_p6, %p932_p4 }
 0x123   : > { %p789_p12 = por %p788_p11, %p787_p10 }
 0x124   : > { %p785_p9 = pneg %p784_p7 }
 0x126   : > { %p790_p13 = pnand %p789_p12, %p785_p9 }
 0x128   : > { %793 = shalt.err (!%p790_p13)
}
 0x129   : > { %700 = dma.vmem_to_hbm [thread:$0]  (%p932_p4), %s581_s23, 128, %s578_s6, %s564_s9  }
 0x12a PF: > { %p706_p0 = scmp.ge.s32.totalorder %s844_s8, 2  ;;  %s592_s24 = sand.u32 1, %s824_s26  }
 0x12b   : > { %s593_s25 = scalar_lea.sflag [#allocation4], %s592_s24 }
 0x12c   : > { %p703_p1 = pnand %p706_p0, %p939_p8 }
 0x12e   : > { %p704_p2 = pneg %p703_p1 }
 0x130   : > { %819 = dma.done.wait (%p704_p2), %s593_s25, 128  }
 0x131   : > { %821 = vsyncadd (%p704_p2), %s593_s25, 4294967168  ;;  %s21_s8 = sadd.s32 1, %s844_s8   ;;  %s1022_s26 = smov %s828_s27 }
 0x132   : > { %p18_p3 = scmp.ge.s32.totalorder %s21_s8, 4   ;;  %s1023_s27 = smov %s832_s28 }
 0x133   : > { %s1024_s28 = smov %s945_s15  ;;  %s1025_s29 = smov %s840_s30 }
 0x134   : > { %s1026_s30 = smov %s1028_s10  ;;  %20 = sbr.rel (!%p18_p3) target bundleno = 6 (0x6), region = 86 }
 0x139   :  { %598 = vsyncpa [#allocation4], 1 }
 0x13a   :  { %600 = vsyncpa [#allocation4 + $0x1], 1 }

</bundles_post_ra>
